<compile_context>
chip_gen: v5e
topology: v5e:2x2
jax: 0.10.0
libtpu: 0.0.40
codegen_flags: <defaults>
</compile_context>

<pallas_src>
import jax
import jax.numpy as jnp
from jax.experimental import pallas as pl
from jax.experimental.pallas import tpu as pltpu


NOUT_PAD = 16  # 10 (logit1) + 1 (logit2), padded to 16 lanes for one fused store
ALIGN = 16     # bf16 sublane packing is (16, 128); 16 also satisfies f32's (8, 128)


def mlp_kernel(x_ref, w1_ref, b1_ref, w23_ref, b23_ref, out_ref):
    # x: (TB, 64) bf16, w1: (64, 32) bf16 -> MXU bf16 matmul, f32 accumulation.
    h = (jnp.dot(x_ref[...], w1_ref[...], preferred_element_type=jnp.float32)
         + b1_ref[...])
    h = jnp.maximum(h, 0.0)
    # Fused output heads: one (32, 16) matmul, one store ([logit1 | logit2 | zero-pad]).
    out_ref[...] = (jnp.dot(h, w23_ref[...], preferred_element_type=jnp.float32)
                    + b23_ref[...])


def _round_up(x, m):
    return (x + m - 1) // m * m


def mlp_forward(user_ids, video_ids, params, tile_b=8192):
    """Glue: embedding gathers + concat in JAX, fused batch-tiled MLP in one Pallas kernel."""
    B = user_ids.shape[0]

    # Pad only the 4-byte ids (not activations) up to a sublane-aligned batch.
    Bp = _round_up(B, ALIGN)
    if Bp != B:
        user_ids = jnp.pad(user_ids, (0, Bp - B))
        video_ids = jnp.pad(video_ids, (0, Bp - B))

    # Gathers + concat fuse in XLA; kernel sees one packed (Bp, 64) bf16 activation.
    ue = jnp.take(params["user_emb"], user_ids, axis=0)    # (Bp, 32) bf16
    ve = jnp.take(params["video_emb"], video_ids, axis=0)  # (Bp, 32) bf16
    x = jnp.concatenate([ue, ve], axis=1)                   # (Bp, 64) bf16

    # Pre-fuse weights once (tiny; done at trace time under jit).
    w1 = params["w1"].astype(jnp.bfloat16)                  # (64, 32)
    w23 = (jnp.zeros((32, NOUT_PAD), jnp.float32)
           .at[:, :10].set(params["w2"])
           .at[:, 10:11].set(params["w3"]))
    b23 = (jnp.zeros((1, NOUT_PAD), jnp.float32)
           .at[:, :10].set(params["b2"])
           .at[:, 10:11].set(params["b3"]))

    # Batch tile: as large as tile_b allows, but ensure >= 2 grid steps when the
    # batch is big enough so both v7x TensorCores get work. Last tile may be ragged.
    TB = min(tile_b, Bp)
    if 2 * ALIGN <= Bp <= 2 * tile_b:
        TB = min(TB, max(ALIGN, _round_up((Bp + 1) // 2, ALIGN)))
    grid = (pl.cdiv(Bp, TB),)

    # VMEM budget: double-buffered (TB,64)bf16 in + (TB,16->128 lanes)f32 out + weights.
    vmem_limit = min(max(32 * 1024 * 1024, 4 * TB * 1024), 64 * 1024 * 1024)

    x_spec = pl.BlockSpec((TB, 64), lambda i: (i, 0))
    # Weights/biases: constant block index -> DMA'd once, VMEM-resident across tiles.
    w1_spec = pl.BlockSpec((64, 32), lambda i: (0, 0))
    b1_spec = pl.BlockSpec((1, 32), lambda i: (0, 0))
    w23_spec = pl.BlockSpec((32, NOUT_PAD), lambda i: (0, 0))
    b23_spec = pl.BlockSpec((1, NOUT_PAD), lambda i: (0, 0))
    out_spec = pl.BlockSpec((TB, NOUT_PAD), lambda i: (i, 0))

    out = pl.pallas_call(
        mlp_kernel,
        grid=grid,
        in_specs=[x_spec, w1_spec, b1_spec, w23_spec, b23_spec],
        out_specs=out_spec,
        out_shape=jax.ShapeDtypeStruct((Bp, NOUT_PAD), jnp.float32),
        compiler_params=pltpu.CompilerParams(
            dimension_semantics=("parallel",),
            vmem_limit_bytes=vmem_limit),
    )(x, w1, params["b1"], w23, b23)

    logit1 = out[:B, :10]
    logit2 = out[:B, 10:11]
    return logit1, logit2


def init_params(key, n_users, n_items, emb_dim=32, layers=(64, 32)):
    ks = jax.random.split(key, 8)

    def uniform(k, shape, bound):
        return jax.random.uniform(k, shape, jnp.float32, -bound, bound)

    in1, out1 = layers[0], layers[1]
    return {
        # Embedding tables (torch default init: N(0,1)); stored bf16 to halve HBM traffic.
        "user_emb": jax.random.normal(ks[0], (n_users, emb_dim), jnp.float32).astype(jnp.bfloat16),
        "video_emb": jax.random.normal(ks[1], (n_items, emb_dim), jnp.float32).astype(jnp.bfloat16),
        # Linear(64, 32), stored as (in, out)
        "w1": uniform(ks[2], (in1, out1), 1.0 / jnp.sqrt(in1)),
        "b1": uniform(ks[3], (1, out1), 1.0 / jnp.sqrt(in1)),
        # output_layer1: Linear(32, 10)
        "w2": uniform(ks[4], (out1, 10), 1.0 / jnp.sqrt(out1)),
        "b2": uniform(ks[5], (1, 10), 1.0 / jnp.sqrt(out1)),
        # output_layer2: Linear(32, 1)
        "w3": uniform(ks[6], (out1, 1), 1.0 / jnp.sqrt(out1)),
        "b3": uniform(ks[7], (1, 1), 1.0 / jnp.sqrt(out1)),
    }


def reference_forward(user_ids, video_ids, params):
    # Mirrors the kernel's precision choices (bf16 embeddings + bf16-rounded w1,
    # f32 accumulation) so the comparison is tight.
    ue = jnp.take(params["user_emb"], user_ids, axis=0).astype(jnp.float32)
    ve = jnp.take(params["video_emb"], video_ids, axis=0).astype(jnp.float32)
    x = jnp.concatenate([ue, ve], axis=1)
    w1 = params["w1"].astype(jnp.bfloat16).astype(jnp.float32)
    h = jnp.maximum(x @ w1 + params["b1"], 0.0)
    return h @ params["w2"] + params["b2"], h @ params["w3"] + params["b3"]


if __name__ == "__main__":
    # Small synthetic vocab sizes (module defaults are huge: 5.9M users / 50K items).
    n_users, n_items = 1024, 512

    key = jax.random.PRNGKey(0)
    k_params, k_u, k_v = jax.random.split(key, 3)
    params = init_params(k_params, n_users, n_items)

    fwd = jax.jit(mlp_forward)

    # Test 1: small, aligned batch (single grid step).
    batch = 8
    user_ids = jax.random.randint(k_u, (batch,), 0, n_users, dtype=jnp.int32)
    video_ids = jax.random.randint(k_v, (batch,), 0, n_items, dtype=jnp.int32)
    logit1, logit2 = fwd(user_ids, video_ids, params)
    jax.block_until_ready((logit1, logit2))
    ref1, ref2 = reference_forward(user_ids, video_ids, params)
    assert logit1.shape == (batch, 10) and logit2.shape == (batch, 1)
    assert jnp.allclose(logit1, ref1, atol=5e-3, rtol=5e-3)
    assert jnp.allclose(logit2, ref2, atol=5e-3, rtol=5e-3)

    # Test 2: batch not a multiple of 16 (exercises id padding, 2-step grid with a
    # ragged last tile, and output slicing).
    batch2 = 37
    k_u2, k_v2 = jax.random.split(jax.random.PRNGKey(1))
    user_ids2 = jax.random.randint(k_u2, (batch2,), 0, n_users, dtype=jnp.int32)
    video_ids2 = jax.random.randint(k_v2, (batch2,), 0, n_items, dtype=jnp.int32)
    l1b, l2b = fwd(user_ids2, video_ids2, params)
    jax.block_until_ready((l1b, l2b))
    r1b, r2b = reference_forward(user_ids2, video_ids2, params)
    assert l1b.shape == (batch2, 10) and l2b.shape == (batch2, 1)
    assert jnp.allclose(l1b, r1b, atol=5e-3, rtol=5e-3)
    assert jnp.allclose(l2b, r2b, atol=5e-3, rtol=5e-3)

    print("KERNEL_OK")
</pallas_src>

<mosaic_0001>
module attributes {stable_mosaic.version = 11 : i64} {
  func.func @mlp_kernel(%arg0: i32, %arg1: memref<16x64xbf16, #tpu.memory_space<vmem>>, %arg2: memref<64x32xbf16, #tpu.memory_space<vmem>>, %arg3: memref<1x32xf32, #tpu.memory_space<vmem>>, %arg4: memref<32x16xf32, #tpu.memory_space<vmem>>, %arg5: memref<1x16xf32, #tpu.memory_space<vmem>>, %arg6: memref<16x16xf32, #tpu.memory_space<vmem>>) attributes {dimension_semantics = [#tpu.dimension_semantics<parallel>], iteration_bounds = array<i64: 1>, scalar_prefetch = 0 : i64, scratch_operands = 0 : i64, tpu.core_type = #tpu.core_type<tc>, window_params = [{transform_indices = @transform_0, window_bounds = array<i64: 16, 64>}, {pipeline_mode = #tpu.pipeline_mode<synchronous>, transform_indices = @transform_1, window_bounds = array<i64: 64, 32>}, {pipeline_mode = #tpu.pipeline_mode<synchronous>, transform_indices = @transform_2, window_bounds = array<i64: 1, 32>}, {pipeline_mode = #tpu.pipeline_mode<synchronous>, transform_indices = @transform_3, window_bounds = array<i64: 32, 16>}, {pipeline_mode = #tpu.pipeline_mode<synchronous>, transform_indices = @transform_4, window_bounds = array<i64: 1, 16>}, {transform_indices = @transform_5, window_bounds = array<i64: 16, 16>}]} {
    %c0 = arith.constant 0 : index
    %c0_0 = arith.constant 0 : index
    %0 = vector.load %arg1[%c0, %c0_0] : memref<16x64xbf16, #tpu.memory_space<vmem>>, vector<16x64xbf16>
    %c0_1 = arith.constant 0 : index
    %c0_2 = arith.constant 0 : index
    %1 = vector.load %arg2[%c0_1, %c0_2] : memref<64x32xbf16, #tpu.memory_space<vmem>>, vector<64x32xbf16>
    %cst = arith.constant dense<0.000000e+00> : vector<16x32xf32>
    %2 = tpu.matmul %0, %1, %cst {dimension_numbers = #tpu.dot_dimension_numbers<[1], [0], [0], [1], [0, 0, 1, 1], [], []>} : vector<16x64xbf16>, vector<64x32xbf16>, vector<16x32xf32> -> vector<16x32xf32>
    %c0_3 = arith.constant 0 : index
    %c0_4 = arith.constant 0 : index
    %3 = vector.load %arg3[%c0_3, %c0_4] : memref<1x32xf32, #tpu.memory_space<vmem>>, vector<1x32xf32>
    %4 = vector.broadcast %3 : vector<1x32xf32> to vector<16x32xf32>
    %5 = arith.addf %2, %4 : vector<16x32xf32>
    %cst_5 = arith.constant 0.000000e+00 : f32
    %6 = vector.broadcast %cst_5 : f32 to vector<16x32xf32>
    %7 = arith.maximumf %5, %6 : vector<16x32xf32>
    %c0_6 = arith.constant 0 : index
    %c0_7 = arith.constant 0 : index
    %8 = vector.load %arg4[%c0_6, %c0_7] : memref<32x16xf32, #tpu.memory_space<vmem>>, vector<32x16xf32>
    %cst_8 = arith.constant dense<0.000000e+00> : vector<16x16xf32>
    %9 = tpu.matmul %7, %8, %cst_8 {dimension_numbers = #tpu.dot_dimension_numbers<[1], [0], [0], [1], [0, 0, 1, 1], [], []>} : vector<16x32xf32>, vector<32x16xf32>, vector<16x16xf32> -> vector<16x16xf32>
    %c0_9 = arith.constant 0 : index
    %c0_10 = arith.constant 0 : index
    %10 = vector.load %arg5[%c0_9, %c0_10] : memref<1x16xf32, #tpu.memory_space<vmem>>, vector<1x16xf32>
    %11 = vector.broadcast %10 : vector<1x16xf32> to vector<16x16xf32>
    %12 = arith.addf %9, %11 : vector<16x16xf32>
    %c0_11 = arith.constant 0 : index
    %c0_12 = arith.constant 0 : index
    %13 = vector.load %arg6[%c0_11, %c0_12] : memref<16x16xf32, #tpu.memory_space<vmem>>, vector<16x16xf32>
    tpu.vector_store %arg6[%c0_11, %c0_12], %12 {strides = array<i32>} : memref<16x16xf32, #tpu.memory_space<vmem>>, vector<16x16xf32>,
    return
  }
  func.func @transform_0(%arg0: i32) -> (i32, i32) {
    %c0_i32 = arith.constant 0 : i32
    %c0_i32_0 = arith.constant 0 : i32
    return %arg0, %c0_i32 : i32, i32
  }
  func.func @transform_1(%arg0: i32) -> (i32, i32) {
    %c0_i32 = arith.constant 0 : i32
    %c0_i32_0 = arith.constant 0 : i32
    %c0_i32_1 = arith.constant 0 : i32
    return %c0_i32, %c0_i32_0 : i32, i32
  }
  func.func @transform_2(%arg0: i32) -> (i32, i32) {
    %c0_i32 = arith.constant 0 : i32
    %c0_i32_0 = arith.constant 0 : i32
    %c0_i32_1 = arith.constant 0 : i32
    return %c0_i32, %c0_i32_0 : i32, i32
  }
  func.func @transform_3(%arg0: i32) -> (i32, i32) {
    %c0_i32 = arith.constant 0 : i32
    %c0_i32_0 = arith.constant 0 : i32
    %c0_i32_1 = arith.constant 0 : i32
    return %c0_i32, %c0_i32_0 : i32, i32
  }
  func.func @transform_4(%arg0: i32) -> (i32, i32) {
    %c0_i32 = arith.constant 0 : i32
    %c0_i32_0 = arith.constant 0 : i32
    %c0_i32_1 = arith.constant 0 : i32
    return %c0_i32, %c0_i32_0 : i32, i32
  }
  func.func @transform_5(%arg0: i32) -> (i32, i32) {
    %c0_i32 = arith.constant 0 : i32
    %c0_i32_0 = arith.constant 0 : i32
    return %arg0, %c0_i32 : i32, i32
  }
}

</mosaic_0001>

<bundles_post_ra>
// kernel: mlp_forward.1
= control target key start
LH: loop header
LB: loop body
LE: loop exit
PB: predicated region body
PF: predicated region fallthrough
CT: control target
= control target key end

     0   :  { %vm64_vm0 = vcmask 523264   ;;  %vm92_vm1 = vcmask 261120   ;;  %vm122_vm2 = vcmask 130048   ;;  %s228_s1 = inlined_call_operand.vmem [shape: bf16[64,32], index: 1, kind: input, shape index: {}]   ;;  %s229_s3 = inlined_call_operand.vmem [shape: f32[32,16], index: 3, kind: input, shape index: {}]   ;;  %s230_s2 = inlined_call_operand.vmem [shape: f32[1,32], index: 2, kind: input, shape index: {}]   ;;  %s231_s0 = inlined_call_operand.vmem [shape: bf16[16,64], index: 0, kind: input, shape index: {}]   ;;  %s232_s4 = inlined_call_operand.vmem [shape: f32[1,16], index: 4, kind: input, shape index: {}]   ;;  %s233_s5 = inlined_call_operand.vmem [shape: f32[16,16], index: 5, kind: output, shape index: {}]  }
   0x1   :  { %v156_v0 = vld [vmem:[%s228_s1 + $0x18] sm:$0xff]  ;;  %v155_v2 = vld [vmem:[%s228_s1 + $0x10] sm:$0xff]  ;;  %v154_v3 = vld [vmem:[%s228_s1 + $0x8] sm:$0xff] }
   0x2   :  { %v87_v1 = vld [vmem:[%s229_s3 + $0x18] sm:$0xff]  ;;  %72 = vmatpush.bf16.msra.mxu0 %v156_v0  ;;  %v153_v4 = vld [vmem:[%s228_s1] sm:$0xff]  ;;  %v86_v6 = vld [vmem:[%s229_s3 + $0x10] sm:$0xff] }
   0x3   :  { %111 = vmatpush.msra.mxu1 %v87_v1  ;;  %v152_v5 = vld [vmem:[%s231_s0] sm:$0xff]  ;;  %v85_v7 = vld [vmem:[%s229_s3 + $0x8] sm:$0xff] }
   0x4   :  { %v84_v8 = vld [vmem:[%s229_s3] sm:$0xff] }
   0x5   :  { %112 = vmatpush.msra.mxu1 %v86_v6  ;;  %v157_v9 = vld [vmem:[%s230_s2] ss:$0 sm:$0xff] }
   0x6   :  { %73 = vmatpush.bf16.msra.mxu0 %v155_v2  ;;  %v158_v16 = vld [vmem:[%s232_s4] ss:$0 sm:$0xff] }
   0x7   :  { %113 = vmatpush.msra.mxu1 %v85_v7 }
   0x9   :  { %114 = vmatpush.msra.mxu1 %v84_v8 }
   0xa   :  { %74 = vmatpush.bf16.msra.mxu0 %v154_v3 }
   0xe   :  { %75 = vmatpush.bf16.msra.mxu0 %v153_v4 }
  0x11   :  { %149 = vmatmul.msk.bf16.vlgmr.msra.gmra.mxu0 %vm64_vm0, %v152_v5 }
  0x8e   :  { %v77_v10 = vpop.f32.mrf.mxu0 }
  0x8f   :  { %v78_v11 = vadd.f32 %v157_v9, %v77_v10 }
  0x91   :  { %v82_v12 = vmax.f32 %v78_v11, 0.0 }
  0x93   :  { %150 = vmatmul.msk.f32.vlgmr.msra.gmra.mxu1 %vm92_vm1, %v82_v12 }
  0x96   :  { %v79_v13 = vpop.f32.mrf.mxu0 }
  0x97   :  { %v80_v14 = vadd.f32 %v157_v9, %v79_v13 }
  0x99   :  { %v83_v15 = vmax.f32 %v80_v14, 0.0 }
  0x9b   :  { %151 = vmatmul.msk.f32.gmra.mxu1 %vm92_vm1, %v83_v15 }
 0x110   :  { %v116_v17 = vpop.f32.mrf.mxu1 }
 0x111   :  { %v117_v18 = vadd.f32 %v158_v16, %v116_v17 }
 0x113   :  { %123 = vst.msk [vmem:[%s233_s5] sm:$0xff] %vm122_vm2, %v117_v18 }
 0x118   :  { %v119_v19 = vpop.f32.mrf.mxu1 }
 0x119   :  { %v120_v20 = vadd.f32 %v158_v16, %v119_v19 }
 0x11b   :  { %124 = vst.msk [vmem:[%s233_s5 + $0x8] sm:$0xff] %vm122_vm2, %v120_v20 }

</bundles_post_ra>
